<compile_context>
chip_gen: v7x
topology: tpu7x:2x2x1
jax: 0.10.0
libtpu: 0.0.40
codegen_flags: <defaults>
</compile_context>

<pallas_src>
import jax
import jax.numpy as jnp
from jax.experimental import pallas as pl
from jax.experimental.pallas import tpu as pltpu

TE = 1024      # edges per grid step (lane-dense, multiple of 128)
NB_MAX = 256   # node rows per block (bounds vreg/VMEM pressure of the gather)


def _round_up(v, m):
    return ((v + m - 1) // m) * m


def node_score_kernel(x_ref, w1_ref, b1_ref, wc_ref, bc_ref, s_ref):
    # x_ref: (NB, C_in); w1: (C_in, H); b1: (1, H); wc: (H, 2); bc: (1, 2); s: (NB, 2)
    h = jnp.dot(x_ref[...], w1_ref[...], preferred_element_type=jnp.float32)
    h = jnp.maximum(h + b1_ref[...], 0.0)
    # Folded: (h @ W2 + b2) @ [a1|a2]  ==  h @ (W2@[a1|a2]) + b2@[a1|a2]
    s_ref[...] = jnp.dot(h, wc_ref[...], preferred_element_type=jnp.float32) + bc_ref[...]


def edge_score_kernel(s_ref, ei_ref, out_ref):
    # s_ref:   (NB, 2)  node-score chunk c (col 0: source half, col 1: target half)
    # ei_ref:  (2, TE)  int32 edge-index tile t (row 0 = i, row 1 = j)
    # out_ref: (1, TE)  f32 lane-dense edge-score tile (resident across node chunks)
    c = pl.program_id(1)
    nb = s_ref.shape[0]
    te = out_ref.shape[-1]

    @pl.when(c == 0)
    def _():
        out_ref[...] = jnp.zeros_like(out_ref)

    ei = ei_ref[...]                                                  # (2, TE)
    node_iota = jax.lax.broadcasted_iota(jnp.int32, (nb, te), 0) + c * nb
    # VPU compare/select gather of both halves, ONE shared XLU sublane-reduce.
    contrib = (jnp.where(node_iota == ei[0:1, :], s_ref[:, 0:1], 0.0)
               + jnp.where(node_iota == ei[1:2, :], s_ref[:, 1:2], 0.0))
    out_ref[...] += contrib.sum(axis=0, keepdims=True)                # (1, TE)

    @pl.when(c == pl.num_programs(1) - 1)
    def _():
        out_ref[...] = jnp.tanh(out_ref[...])


def mgnn_attention(x, edge_index, params):
    """x: [N, C_in] float32, edge_index: [2, E] int32 -> [E] float32."""
    N, C_in = x.shape
    E = edge_index.shape[1]
    w1, b1, w2, b2, a = (params["w1"], params["b1"], params["w2"],
                         params["b2"], params["a"])
    H = w1.shape[1]

    # Fold last Linear + attention vector into a single (H, 2) projection.
    a12 = jnp.concatenate([a[:H, :], a[H:, :]], axis=1)     # (H, 2)
    wc = (w2 @ a12).astype(jnp.float32)                     # (H, 2)
    bc = (b2 @ a12).astype(jnp.float32)                     # (1, 2)

    # ---- node tiling ----
    NB = min(NB_MAX, _round_up(N, 8))
    N_pad = _round_up(N, NB)
    n_node_chunks = N_pad // NB
    x_p = jnp.pad(x, ((0, N_pad - N), (0, 0))) if N_pad != N else x

    # ---- Kernel A: node-level MLP + folded attention projection ----
    s = pl.pallas_call(
        node_score_kernel,
        out_shape=jax.ShapeDtypeStruct((N_pad, 2), jnp.float32),
        grid=(N_pad // NB,),
        in_specs=[
            pl.BlockSpec((NB, C_in), lambda i: (i, 0)),     # x row block
            pl.BlockSpec((C_in, H), lambda i: (0, 0)),      # W1 (constant)
            pl.BlockSpec((1, H), lambda i: (0, 0)),         # b1 (constant)
            pl.BlockSpec((H, 2), lambda i: (0, 0)),         # W2@[a1|a2] (constant)
            pl.BlockSpec((1, 2), lambda i: (0, 0)),         # b2@[a1|a2] (constant)
        ],
        out_specs=pl.BlockSpec((NB, 2), lambda i: (i, 0)),
        compiler_params=pltpu.CompilerParams(
            dimension_semantics=("parallel",)),
    )(x_p, w1, b1, wc, bc)

    # ---- edge tiling ----
    n_edge_tiles = pl.cdiv(E, TE)
    e_pad = n_edge_tiles * TE
    ei = edge_index.astype(jnp.int32)
    if e_pad != E:
        ei = jnp.pad(ei, ((0, 0), (0, e_pad - E)))          # pad with node 0 (valid)

    # ---- Kernel B: edge-tiled gather (+node chunking) + tanh, lane-dense out ----
    out = pl.pallas_call(
        edge_score_kernel,
        out_shape=jax.ShapeDtypeStruct((1, e_pad), jnp.float32),
        grid=(n_edge_tiles, n_node_chunks),                 # edge axis, node-chunk axis
        in_specs=[
            pl.BlockSpec((NB, 2), lambda t, c: (c, 0)),     # node-score chunk
            pl.BlockSpec((2, TE), lambda t, c: (0, t)),     # edge-index tile
        ],
        out_specs=pl.BlockSpec((1, TE), lambda t, c: (0, t)),
        compiler_params=pltpu.CompilerParams(
            # edge tiles independent -> megacore sharding on v7x;
            # node-chunk (reduction) axis last and "arbitrary".
            dimension_semantics=("parallel", "arbitrary"),
        ),
    )(s, ei)
    return out.reshape(e_pad)[:E]


def mgnn_attention_reference(x, edge_index, params):
    h = jnp.maximum(x @ params["w1"] + params["b1"][0], 0.0)
    h2 = h @ params["w2"] + params["b2"][0]
    xi = h2[edge_index[0]]
    xj = h2[edge_index[1]]
    cat = jnp.concatenate([xi, xj], axis=1)
    return jnp.tanh(cat @ params["a"]).reshape(-1)


if __name__ == "__main__":
    key = jax.random.PRNGKey(0)
    N, C_IN, H, E = 16, 4, 32, 32  # nodes, in_channels, hidden_channels, edges
    ks = jax.random.split(key, 7)

    x = jax.random.normal(ks[0], (N, C_IN), jnp.float32)
    edge_index = jax.random.randint(ks[1], (2, E), 0, N, dtype=jnp.int32)

    def glorot(k, shape):
        fan_in, fan_out = shape
        lim = (6.0 / (fan_in + fan_out)) ** 0.5
        return jax.random.uniform(k, shape, jnp.float32, -lim, lim)

    params = {
        "w1": glorot(ks[2], (C_IN, H)),                            # MLP lin 1
        "b1": 0.1 * jax.random.normal(ks[3], (1, H), jnp.float32),
        "w2": glorot(ks[4], (H, H)),                               # MLP lin 2
        "b2": 0.1 * jax.random.normal(ks[5], (1, H), jnp.float32),
        "a": glorot(ks[6], (2 * H, 1)),                            # attention vec
        # self.W (bilinear path) is unused for method='concat'
    }

    out = mgnn_attention(x, edge_index, params)
    jax.block_until_ready(out)

    ref = mgnn_attention_reference(x, edge_index, params)
    assert out.shape == (E,)
    assert jnp.allclose(out, ref, atol=1e-4, rtol=1e-4), \
        f"max abs err {jnp.max(jnp.abs(out - ref))}"
    print("KERNEL_OK")
</pallas_src>

<mosaic_0001>
module attributes {stable_mosaic.version = 11 : i64} {
  func.func @node_score_kernel(%arg0: i32, %arg1: memref<16x4xf32, #tpu.memory_space<vmem>>, %arg2: memref<4x32xf32, #tpu.memory_space<vmem>>, %arg3: memref<1x32xf32, #tpu.memory_space<vmem>>, %arg4: memref<32x2xf32, #tpu.memory_space<vmem>>, %arg5: memref<1x2xf32, #tpu.memory_space<vmem>>, %arg6: memref<16x2xf32, #tpu.memory_space<vmem>>) attributes {dimension_semantics = [#tpu.dimension_semantics<parallel>], iteration_bounds = array<i64: 1>, scalar_prefetch = 0 : i64, scratch_operands = 0 : i64, tpu.core_type = #tpu.core_type<tc>, window_params = [{transform_indices = @transform_0, window_bounds = array<i64: 16, 4>}, {pipeline_mode = #tpu.pipeline_mode<synchronous>, transform_indices = @transform_1, window_bounds = array<i64: 4, 32>}, {pipeline_mode = #tpu.pipeline_mode<synchronous>, transform_indices = @transform_2, window_bounds = array<i64: 1, 32>}, {pipeline_mode = #tpu.pipeline_mode<synchronous>, transform_indices = @transform_3, window_bounds = array<i64: 32, 2>}, {pipeline_mode = #tpu.pipeline_mode<synchronous>, transform_indices = @transform_4, window_bounds = array<i64: 1, 2>}, {transform_indices = @transform_5, window_bounds = array<i64: 16, 2>}]} {
    %c0 = arith.constant 0 : index
    %c0_0 = arith.constant 0 : index
    %0 = vector.load %arg1[%c0, %c0_0] : memref<16x4xf32, #tpu.memory_space<vmem>>, vector<16x4xf32>
    %c0_1 = arith.constant 0 : index
    %c0_2 = arith.constant 0 : index
    %1 = vector.load %arg2[%c0_1, %c0_2] : memref<4x32xf32, #tpu.memory_space<vmem>>, vector<4x32xf32>
    %cst = arith.constant dense<0.000000e+00> : vector<16x32xf32>
    %2 = tpu.matmul %0, %1, %cst {dimension_numbers = #tpu.dot_dimension_numbers<[1], [0], [0], [1], [0, 0, 1, 1], [], []>} : vector<16x4xf32>, vector<4x32xf32>, vector<16x32xf32> -> vector<16x32xf32>
    %c0_3 = arith.constant 0 : index
    %c0_4 = arith.constant 0 : index
    %3 = vector.load %arg3[%c0_3, %c0_4] : memref<1x32xf32, #tpu.memory_space<vmem>>, vector<1x32xf32>
    %4 = vector.broadcast %3 : vector<1x32xf32> to vector<16x32xf32>
    %5 = arith.addf %2, %4 : vector<16x32xf32>
    %cst_5 = arith.constant 0.000000e+00 : f32
    %6 = vector.broadcast %cst_5 : f32 to vector<16x32xf32>
    %7 = arith.maximumf %5, %6 : vector<16x32xf32>
    %c0_6 = arith.constant 0 : index
    %c0_7 = arith.constant 0 : index
    %8 = vector.load %arg4[%c0_6, %c0_7] : memref<32x2xf32, #tpu.memory_space<vmem>>, vector<32x2xf32>
    %cst_8 = arith.constant dense<0.000000e+00> : vector<16x2xf32>
    %9 = tpu.matmul %7, %8, %cst_8 {dimension_numbers = #tpu.dot_dimension_numbers<[1], [0], [0], [1], [0, 0, 1, 1], [], []>} : vector<16x32xf32>, vector<32x2xf32>, vector<16x2xf32> -> vector<16x2xf32>
    %c0_9 = arith.constant 0 : index
    %c0_10 = arith.constant 0 : index
    %10 = vector.load %arg5[%c0_9, %c0_10] : memref<1x2xf32, #tpu.memory_space<vmem>>, vector<1x2xf32>
    %11 = vector.broadcast %10 : vector<1x2xf32> to vector<16x2xf32>
    %12 = arith.addf %9, %11 : vector<16x2xf32>
    %c0_11 = arith.constant 0 : index
    %c0_12 = arith.constant 0 : index
    %13 = vector.load %arg6[%c0_11, %c0_12] : memref<16x2xf32, #tpu.memory_space<vmem>>, vector<16x2xf32>
    tpu.vector_store %arg6[%c0_11, %c0_12], %12 {strides = array<i32>} : memref<16x2xf32, #tpu.memory_space<vmem>>, vector<16x2xf32>,
    return
  }
  func.func @transform_0(%arg0: i32) -> (i32, i32) {
    %c0_i32 = arith.constant 0 : i32
    %c0_i32_0 = arith.constant 0 : i32
    return %arg0, %c0_i32 : i32, i32
  }
  func.func @transform_1(%arg0: i32) -> (i32, i32) {
    %c0_i32 = arith.constant 0 : i32
    %c0_i32_0 = arith.constant 0 : i32
    %c0_i32_1 = arith.constant 0 : i32
    return %c0_i32, %c0_i32_0 : i32, i32
  }
  func.func @transform_2(%arg0: i32) -> (i32, i32) {
    %c0_i32 = arith.constant 0 : i32
    %c0_i32_0 = arith.constant 0 : i32
    %c0_i32_1 = arith.constant 0 : i32
    return %c0_i32, %c0_i32_0 : i32, i32
  }
  func.func @transform_3(%arg0: i32) -> (i32, i32) {
    %c0_i32 = arith.constant 0 : i32
    %c0_i32_0 = arith.constant 0 : i32
    %c0_i32_1 = arith.constant 0 : i32
    return %c0_i32, %c0_i32_0 : i32, i32
  }
  func.func @transform_4(%arg0: i32) -> (i32, i32) {
    %c0_i32 = arith.constant 0 : i32
    %c0_i32_0 = arith.constant 0 : i32
    %c0_i32_1 = arith.constant 0 : i32
    return %c0_i32, %c0_i32_0 : i32, i32
  }
  func.func @transform_5(%arg0: i32) -> (i32, i32) {
    %c0_i32 = arith.constant 0 : i32
    %c0_i32_0 = arith.constant 0 : i32
    return %arg0, %c0_i32 : i32, i32
  }
}

</mosaic_0001>

<bundles_post_ra>
// kernel: tpu_custom_call.1
= control target key start
LH: loop header
LB: loop body
LE: loop exit
PB: predicated region body
PF: predicated region fallthrough
CT: control target
= control target key end

     0   :  { %vm37_vm0 = vcmask 1043456   ;;  %vm30_vm1 = vcmask 31744   ;;  %vm129_vm2 = vcmask 261120   ;;  %vm211_vm3 = vcmask 15360   ;;  %s321_s1 = inlined_call_operand.vmem [shape: f32[4,32], index: 1, kind: input, shape index: {}]   ;;  %s322_s0 = inlined_call_operand.vmem [shape: f32[16,4], index: 0, kind: input, shape index: {}]   ;;  %s323_s3 = inlined_call_operand.vmem [shape: f32[32,2], index: 3, kind: input, shape index: {}]   ;;  %s324_s2 = inlined_call_operand.vmem [shape: f32[1,32], index: 2, kind: input, shape index: {}]   ;;  %s325_s4 = inlined_call_operand.vmem [shape: f32[1,2], index: 4, kind: input, shape index: {}]   ;;  %s326_s5 = inlined_call_operand.vmem [shape: f32[16,2], index: 5, kind: output, shape index: {}]  }
   0x1   :  { %v22_v0 = vld [vmem:[%s321_s1] sm:$0xf]  ;;  %v21_v2 = vld [vmem:[%s322_s0 + $0x8] sm:$0xff]  ;;  %v120_v6 = vld [vmem:[%s323_s3 + $0x10] sm:$0xff] }
   0x2   :  { %v20_v1 = vld [vmem:[%s322_s0] sm:$0xff]  ;;  %234 = vmatprep.subr.msk.mxu0 %vm37_vm0, %v22_v0  ;;  %v119_v4 = vld [vmem:[%s323_s3 + $0x8] sm:$0xff]  ;;  %v121_v7 = vld [vmem:[%s323_s3 + $0x18] sm:$0xff] }
   0x3   :  { %236 = vmatprep.mubr.msk.f32.mxu0 %vm30_vm1, %v20_v1  ;;  %v118_v3 = vld [vmem:[%s323_s3] sm:$0xff]  ;;  %235 = vmatpush3.msk.msra.mxu0 %vm37_vm0, %v22_v0  ;;  %v254_v8 = vpack.c.bf16 %v121_v7, %v120_v6 }
   0x4   :  { %v250_v5 = vpack.c.bf16 %v119_v4, %v118_v3  ;;  %237 = vmatmul.mubr.msk.f32.vlgmr.msra.gmra.mrb[0].mxu0 %vm30_vm1, %v21_v2  ;;  %v218_v9 = vld [vmem:[%s324_s2] ss:$0 sm:$0xff] }
   0x5   :  { %v222_v16 = vld [vmem:[%s325_s4] ss:$0 sm:$0xff] }
   0x6   :  { %251 = vmatprep.subr.bf16.mxu1 %v250_v5 }
   0x7   :  { %253 = vmatpush3.bf16.msra.mxu1 %v250_v5 }
   0x8   :  { %255 = vmatprep.subr.bf16.mxu1 %v254_v8 }
   0xb   :  { %257 = vmatpush3.bf16.msra.mxu1 %v254_v8 }
  0xd7   :  { %v238_v10 = vpop.f32.mrb[0].mxu0 }
  0xd8   :  { %v113_v11 = vadd.f32 %v238_v10, %v218_v9  ;;  %v107_v12 = vpop.f32.mrb[1].mxu0 }
  0xd9   :  { %v108_v13 = vadd.f32 %v218_v9, %v107_v12 }
  0xda   :  { %v117_v15 = vmax.f32 %v113_v11, 0.0 }
  0xdb   :  { %v116_v14 = vmax.f32 %v108_v13, 0.0 }
  0xdd   :  { %247 = vmatprep.mubr.msk.f32.mxu1 %vm129_vm2, %v116_v14 }
  0xde   :  { %248 = vmatmul.mubr.msk.f32.vlgmr.msra.gmra.mrb[0].mxu1 %vm129_vm2, %v117_v15 }
 0x1b1   :  { %v249_v17 = vpop.f32.mrb[0].mxu1 }
 0x1b2   :  { %v208_v18 = vadd.f32 %v249_v17, %v222_v16  ;;  %v202_v19 = vpop.f32.mrb[1].mxu1 }
 0x1b3   :  { %v203_v20 = vadd.f32 %v222_v16, %v202_v19 }
 0x1b4   :  { %213 = vst.msk [vmem:[%s326_s5 + $0x8] sm:$0xff] %vm211_vm3, %v208_v18 }
 0x1b5   :  { %212 = vst.msk [vmem:[%s326_s5] sm:$0xff] %vm211_vm3, %v203_v20 }

</bundles_post_ra>
